<compile_context>
chip_gen: v7x
topology: tpu7x:2x2x1
jax: 0.10.0
libtpu: 0.0.40
codegen_flags: <defaults>
</compile_context>

<pallas_src>
import jax
import jax.numpy as jnp
from jax.experimental import pallas as pl
from jax.experimental.pallas import tpu as pltpu


def _round_up(x, m):
    return ((x + m - 1) // m) * m


# ----------------------------------------------------------------------------
# Parameter packing: one (R, LANE) f32 slab holding the whole MLP.
# Row layout (all section starts are multiples of 8):
#   [off_w1s : off_w1s+S)    W1 rows for `state`   (valid cols [0,H1))
#   [off_w1a : off_w1a+A)    W1 rows for `action`  (valid cols [0,H1))
#   [off_b1]                 b1 row                (valid cols [0,H1))
#   [off_w2  : off_w2+LANE)  W2                    (valid (H1,H2) block)
#   [off_b2]                 b2 row; lane H2 == 1.0 (the "ones column")
#   [off_w3]                 w3 row; lane H2 == b3  (bias folded in)
# ----------------------------------------------------------------------------
def pack_critic_params(params, state_size, action_size):
    w1, b1, w2, b2, w3, b3 = params          # w*: (in, out), b*: (1, out)
    d_in, h1 = w1.shape
    h2 = w2.shape[1]
    assert d_in == state_size + action_size
    lane = _round_up(max(h1, h2 + 1, 8), 128)

    sp = _round_up(state_size, 8)
    ap = _round_up(action_size, 8)
    off_w1s = 0
    off_w1a = off_w1s + sp
    off_b1 = off_w1a + ap
    off_w2 = off_b1 + 8
    off_b2 = off_w2 + lane
    off_w3 = off_b2 + 8
    rows = off_w3 + 8                        # multiple of 8 by construction

    slab = jnp.zeros((rows, lane), jnp.float32)
    slab = slab.at[off_w1s:off_w1s + state_size, :h1].set(w1[:state_size])
    slab = slab.at[off_w1a:off_w1a + action_size, :h1].set(w1[state_size:])
    slab = slab.at[off_b1, :h1].set(b1.reshape(-1))
    slab = slab.at[off_w2:off_w2 + h1, :h2].set(w2)
    slab = slab.at[off_b2, :h2].set(b2.reshape(-1))
    slab = slab.at[off_b2, h2].set(1.0)      # -> h2[:, h2] == relu(0 + 1) == 1
    slab = slab.at[off_w3, :h2].set(w3.reshape(-1))
    slab = slab.at[off_w3, h2].set(b3.reshape(-1)[0])   # b3 rides the ones col

    meta = dict(state_size=state_size, action_size=action_size,
                h1=h1, h2=h2, lane=lane, rows=rows,
                off_w1s=off_w1s, off_w1a=off_w1a, off_b1=off_b1,
                off_w2=off_w2, off_b2=off_b2, off_w3=off_w3)
    return slab, meta


def _make_kernel(meta):
    S = meta["state_size"]
    A = meta["action_size"]
    LANE = meta["lane"]
    o_w1s, o_w1a = meta["off_w1s"], meta["off_w1a"]
    o_b1, o_w2, o_b2, o_w3 = (meta["off_b1"], meta["off_w2"],
                              meta["off_b2"], meta["off_w3"])

    def kernel(s_ref, a_ref, p_ref, o_ref):
        # Static, 8-aligned slices into the VMEM-resident parameter slab.
        w1s = p_ref[o_w1s:o_w1s + S, :]          # (S, LANE)
        w1a = p_ref[o_w1a:o_w1a + A, :]          # (A, LANE)
        b1 = p_ref[o_b1:o_b1 + 1, :]             # (1, LANE)
        w2 = p_ref[o_w2:o_w2 + LANE, :]          # (LANE, LANE), zero-padded
        b2 = p_ref[o_b2:o_b2 + 1, :]             # (1, LANE), lane H2 == 1
        w3 = p_ref[o_w3:o_w3 + 1, :]             # (1, LANE), lane H2 == b3

        # Layer 1: fused concat -- state @ W1_s + action @ W1_a + b1, ReLU.
        h1 = jnp.dot(s_ref[...], w1s, preferred_element_type=jnp.float32)
        h1 = h1 + jnp.dot(a_ref[...], w1a, preferred_element_type=jnp.float32)
        h1 = jnp.maximum(h1 + b1, 0.0)           # padded lanes stay exactly 0

        # Layer 2: (TM, LANE) @ (LANE, LANE) + b2, ReLU.  Lane H2 becomes 1.0.
        h2 = jnp.dot(h1, w2, preferred_element_type=jnp.float32)
        h2 = jnp.maximum(h2 + b2, 0.0)

        # Layer 3 on VPU/XLU (no N=1 MXU matmul): sum over lanes of h2 * w3
        # already includes + b3 via the ones column.
        q = jnp.sum(h2 * w3, axis=-1, keepdims=True)   # (TM, 1)
        o_ref[...] = q.astype(o_ref.dtype)

    return kernel


def critic_forward(state, action, packed, meta, *, max_tile=256):
    """Fused CriticNetwork forward: Q(s, a) -> (B, 1)."""
    B = state.shape[0]
    S = meta["state_size"]
    A = meta["action_size"]
    R, LANE = packed.shape

    # Tile selection that minimizes tail padding:
    #   num_tiles = ceil(B / max_tile), TM = round_up(ceil(B / num_tiles), 8).
    # TM is a multiple of 8, capped at max_tile; B_pad - B < num_tiles * 8.
    num_tiles = -(-B // max_tile)
    TM = _round_up(-(-B // num_tiles), 8)
    B_pad = num_tiles * TM
    if B_pad != B:
        state = jnp.pad(state, ((0, B_pad - B), (0, 0)))
        action = jnp.pad(action, ((0, B_pad - B), (0, 0)))
    grid = (num_tiles,)

    h1, h2 = meta["h1"], meta["h2"]
    flops = int(2 * B_pad * ((S + A) * h1 + h1 * h2 + h2))
    bytes_accessed = int(4 * (B_pad * (S + A) + R * LANE + B_pad))

    out = pl.pallas_call(
        _make_kernel(meta),
        out_shape=jax.ShapeDtypeStruct((B_pad, 1), jnp.float32),
        grid=grid,
        in_specs=[
            pl.BlockSpec((TM, S), lambda i: (i, 0)),       # per-tile activations
            pl.BlockSpec((TM, A), lambda i: (i, 0)),
            pl.BlockSpec((R, LANE), lambda i: (0, 0)),     # params: DMA'd once,
        ],                                                 # VMEM-resident
        out_specs=pl.BlockSpec((TM, 1), lambda i: (i, 0)),
        compiler_params=pltpu.CompilerParams(
            # Independent batch tiles -> megacore-parallel on v7x.
            dimension_semantics=("parallel",),
        ),
        cost_estimate=pl.CostEstimate(flops=flops, transcendentals=0,
                                      bytes_accessed=bytes_accessed),
    )(state, action, packed)
    return out[:B]


# ----------------------------------------------------------------------------
# Parameter init (PyTorch nn.Linear-style fan-in uniform) + pure-JAX reference.
# ----------------------------------------------------------------------------
def init_params(key, state_size, action_size, first_layer_output, second_layer_output):
    d_in = state_size + action_size
    k1, k2, k3, k4, k5, k6 = jax.random.split(key, 6)

    def uniform(k, shape, fan_in):
        bound = 1.0 / jnp.sqrt(fan_in)
        return jax.random.uniform(k, shape, jnp.float32, -bound, bound)

    w1 = uniform(k1, (d_in, first_layer_output), d_in)
    b1 = uniform(k2, (1, first_layer_output), d_in)
    w2 = uniform(k3, (first_layer_output, second_layer_output), first_layer_output)
    b2 = uniform(k4, (1, second_layer_output), first_layer_output)
    w3 = uniform(k5, (second_layer_output, 1), second_layer_output)
    b3 = uniform(k6, (1, 1), second_layer_output)
    return (w1, b1, w2, b2, w3, b3)


def reference_forward(state, action, params):
    w1, b1, w2, b2, w3, b3 = params
    x = jnp.concatenate([state, action], axis=1)
    h1 = jnp.maximum(x @ w1 + b1, 0.0)
    h2 = jnp.maximum(h1 @ w2 + b2, 0.0)
    return h2 @ w3 + b3


if __name__ == "__main__":
    batch = 8
    state_size = 16
    action_size = 16
    first_layer_output = 32
    second_layer_output = 32

    key = jax.random.PRNGKey(0)
    kp, ks, ka, ks2, ka2 = jax.random.split(key, 5)

    params = init_params(kp, state_size, action_size,
                         first_layer_output, second_layer_output)
    packed, meta = pack_critic_params(params, state_size, action_size)

    # Small single-tile case.
    state = jax.random.normal(ks, (batch, state_size), jnp.float32)
    action = jax.random.normal(ka, (batch, action_size), jnp.float32)
    q = jax.block_until_ready(critic_forward(state, action, packed, meta))
    q_ref = reference_forward(state, action, params)
    assert q.shape == (batch, 1), q.shape
    assert jnp.allclose(q, q_ref, atol=1e-4, rtol=1e-4), (q, q_ref)

    # Larger, non-tile-aligned batch: exercises low-waste tiling (TM=152,
    # B_pad=304) + multi-tile grid with the parameter slab resident across tiles.
    batch2 = 300
    state2 = jax.random.normal(ks2, (batch2, state_size), jnp.float32)
    action2 = jax.random.normal(ka2, (batch2, action_size), jnp.float32)
    q2 = jax.block_until_ready(critic_forward(state2, action2, packed, meta))
    q2_ref = reference_forward(state2, action2, params)
    assert q2.shape == (batch2, 1), q2.shape
    assert jnp.allclose(q2, q2_ref, atol=1e-4, rtol=1e-4)

    print("KERNEL_OK")
</pallas_src>

<mosaic_0001>
module attributes {stable_mosaic.version = 11 : i64} {
  func.func @kernel(%arg0: i32, %arg1: memref<8x16xf32, #tpu.memory_space<vmem>>, %arg2: memref<8x16xf32, #tpu.memory_space<vmem>>, %arg3: memref<184x128xf32, #tpu.memory_space<vmem>>, %arg4: memref<8x1xf32, #tpu.memory_space<vmem>>) attributes {dimension_semantics = [#tpu.dimension_semantics<parallel>], iteration_bounds = array<i64: 1>, scalar_prefetch = 0 : i64, scratch_operands = 0 : i64, tpu.core_type = #tpu.core_type<tc>, window_params = [{transform_indices = @transform_0, window_bounds = array<i64: 8, 16>}, {transform_indices = @transform_1, window_bounds = array<i64: 8, 16>}, {pipeline_mode = #tpu.pipeline_mode<synchronous>, transform_indices = @transform_2, window_bounds = array<i64: 184, 128>}, {transform_indices = @transform_3, window_bounds = array<i64: 8, 1>}]} {
    %c0 = arith.constant 0 : index
    %c0_0 = arith.constant 0 : index
    %0 = vector.load %arg3[%c0, %c0_0] : memref<184x128xf32, #tpu.memory_space<vmem>>, vector<16x128xf32>
    %c16 = arith.constant 16 : index
    %c0_1 = arith.constant 0 : index
    %1 = vector.load %arg3[%c16, %c0_1] : memref<184x128xf32, #tpu.memory_space<vmem>>, vector<16x128xf32>
    %c32 = arith.constant 32 : index
    %c0_2 = arith.constant 0 : index
    %2 = vector.load %arg3[%c32, %c0_2] : memref<184x128xf32, #tpu.memory_space<vmem>>, vector<1x128xf32>
    %c40 = arith.constant 40 : index
    %c0_3 = arith.constant 0 : index
    %3 = vector.load %arg3[%c40, %c0_3] : memref<184x128xf32, #tpu.memory_space<vmem>>, vector<128x128xf32>
    %c168 = arith.constant 168 : index
    %c0_4 = arith.constant 0 : index
    %4 = vector.load %arg3[%c168, %c0_4] : memref<184x128xf32, #tpu.memory_space<vmem>>, vector<1x128xf32>
    %c176 = arith.constant 176 : index
    %c0_5 = arith.constant 0 : index
    %5 = vector.load %arg3[%c176, %c0_5] : memref<184x128xf32, #tpu.memory_space<vmem>>, vector<1x128xf32>
    %c0_6 = arith.constant 0 : index
    %c0_7 = arith.constant 0 : index
    %6 = vector.load %arg1[%c0_6, %c0_7] : memref<8x16xf32, #tpu.memory_space<vmem>>, vector<8x16xf32>
    %cst = arith.constant dense<0.000000e+00> : vector<8x128xf32>
    %7 = tpu.matmul %6, %0, %cst {dimension_numbers = #tpu.dot_dimension_numbers<[1], [0], [0], [1], [0, 0, 1, 1], [], []>} : vector<8x16xf32>, vector<16x128xf32>, vector<8x128xf32> -> vector<8x128xf32>
    %c0_8 = arith.constant 0 : index
    %c0_9 = arith.constant 0 : index
    %8 = vector.load %arg2[%c0_8, %c0_9] : memref<8x16xf32, #tpu.memory_space<vmem>>, vector<8x16xf32>
    %cst_10 = arith.constant dense<0.000000e+00> : vector<8x128xf32>
    %9 = tpu.matmul %8, %1, %cst_10 {dimension_numbers = #tpu.dot_dimension_numbers<[1], [0], [0], [1], [0, 0, 1, 1], [], []>} : vector<8x16xf32>, vector<16x128xf32>, vector<8x128xf32> -> vector<8x128xf32>
    %10 = arith.addf %7, %9 : vector<8x128xf32>
    %11 = vector.broadcast %2 : vector<1x128xf32> to vector<8x128xf32>
    %12 = arith.addf %10, %11 : vector<8x128xf32>
    %cst_11 = arith.constant 0.000000e+00 : f32
    %13 = vector.broadcast %cst_11 : f32 to vector<8x128xf32>
    %14 = arith.maximumf %12, %13 : vector<8x128xf32>
    %cst_12 = arith.constant dense<0.000000e+00> : vector<8x128xf32>
    %15 = tpu.matmul %14, %3, %cst_12 {dimension_numbers = #tpu.dot_dimension_numbers<[1], [0], [0], [1], [0, 0, 1, 1], [], []>} : vector<8x128xf32>, vector<128x128xf32>, vector<8x128xf32> -> vector<8x128xf32>
    %16 = vector.broadcast %4 : vector<1x128xf32> to vector<8x128xf32>
    %17 = arith.addf %15, %16 : vector<8x128xf32>
    %cst_13 = arith.constant 0.000000e+00 : f32
    %18 = vector.broadcast %cst_13 : f32 to vector<8x128xf32>
    %19 = arith.maximumf %17, %18 : vector<8x128xf32>
    %20 = vector.broadcast %5 : vector<1x128xf32> to vector<8x128xf32>
    %21 = arith.mulf %19, %20 : vector<8x128xf32>
    %cst_14 = arith.constant dense<0.000000e+00> : vector<8xf32>
    %22 = vector.multi_reduction <add>, %21, %cst_14 [1] : vector<8x128xf32> to vector<8xf32>
    %23 = vector.shape_cast %22 : vector<8xf32> to vector<8x1xf32>
    %c0_15 = arith.constant 0 : index
    %c0_16 = arith.constant 0 : index
    %24 = vector.load %arg4[%c0_15, %c0_16] : memref<8x1xf32, #tpu.memory_space<vmem>>, vector<8x1xf32>
    tpu.vector_store %arg4[%c0_15, %c0_16], %23 {strides = array<i32>} : memref<8x1xf32, #tpu.memory_space<vmem>>, vector<8x1xf32>,
    return
  }
  func.func @transform_0(%arg0: i32) -> (i32, i32) {
    %c0_i32 = arith.constant 0 : i32
    %c0_i32_0 = arith.constant 0 : i32
    return %arg0, %c0_i32 : i32, i32
  }
  func.func @transform_1(%arg0: i32) -> (i32, i32) {
    %c0_i32 = arith.constant 0 : i32
    %c0_i32_0 = arith.constant 0 : i32
    return %arg0, %c0_i32 : i32, i32
  }
  func.func @transform_2(%arg0: i32) -> (i32, i32) {
    %c0_i32 = arith.constant 0 : i32
    %c0_i32_0 = arith.constant 0 : i32
    %c0_i32_1 = arith.constant 0 : i32
    return %c0_i32, %c0_i32_0 : i32, i32
  }
  func.func @transform_3(%arg0: i32) -> (i32, i32) {
    %c0_i32 = arith.constant 0 : i32
    %c0_i32_0 = arith.constant 0 : i32
    return %arg0, %c0_i32 : i32, i32
  }
}

</mosaic_0001>

<bundles_post_ra>
// kernel: tpu_custom_call.1
= control target key start
LH: loop header
LB: loop body
LE: loop exit
PB: predicated region body
PF: predicated region fallthrough
CT: control target
= control target key end

     0   :  { %8 = vsyncpa [#allocation3], 0  ;;  %s576_s0 = inlined_call_operand.hbm [shape: f32[8,16], index: 0, kind: input, shape index: {}]   ;;  %s577_s1 = inlined_call_operand.hbm [shape: f32[8,16], index: 1, kind: input, shape index: {}]   ;;  %s578_s2 = inlined_call_operand.hbm [shape: f32[184,128], index: 2, kind: input, shape index: {}]   ;;  %s579_s3 = inlined_call_operand.vmem [shape: f32[8,1], index: 3, kind: output, shape index: {}]  }
   0x1   :  { %9 = vsyncpa [#allocation5], 0  ;;  %s504_s12 = smov [#allocation4]   ;;  %s505_s14 = smov [#allocation2]  }
   0x2   :  { %s26_s13 = sshll.u32 %s504_s12, 4  ;;  %s16_s15 = sshll.u32 %s505_s14, 4  ;;  %s27_s13 = int_to_ptr.vmem [resolvable:$true] %s26_s13  ;;  %s17_s15 = int_to_ptr.vmem [resolvable:$true] %s16_s15 }
   0x3   :  { %s434_s18 = scalar_lea.hbm %s577_s1, 128 }
   0x4   :  { %p435_p0 = scmp.ne.s32.totalorder %s577_s1, %s434_s18  ;;  %p438_p1 = scmp.lt.u32.totalorder %s434_s18, %s577_s1 }
   0x6   :  { %p440_p2 = pnand %p438_p1, %p435_p0 }
   0x8   :  { %443 = shalt.err (!%p440_p2)
}
   0x9   :  { %s444_s23 = scalar_lea.vmem %s27_s13, 128  ;;  %p449_p4 = scmp.lt.s32.totalorder %s27_s13, %s27_s13 }
   0xa   :  { %p445_p3 = scmp.ne.s32.totalorder %s27_s13, %s444_s23  ;;  %p450_p5 = scmp.lt.s32.totalorder %s444_s23, %s444_s23 }
   0xc   :  { %p451_p6 = por %p450_p5, %p449_p4 }
   0xe   :  { %p452_p7 = pnand %p451_p6, %p445_p3 }
  0x10   :  { %455 = shalt.err (!%p452_p7)
}
  0x11   :  { %29 = dma.hbm_to_vmem [thread:$0]  %s577_s1, 128, %s27_s13, [#allocation5]  }
  0x12   :  { %s456_s28 = scalar_lea.hbm %s576_s0, 128 }
  0x13   :  { %p457_p8 = scmp.ne.s32.totalorder %s576_s0, %s456_s28  ;;  %p460_p9 = scmp.lt.u32.totalorder %s456_s28, %s576_s0 }
  0x15   :  { %p462_p10 = pnand %p460_p9, %p457_p8 }
  0x17   :  { %465 = shalt.err (!%p462_p10)
}
  0x18   :  { %s466_s6 = scalar_lea.vmem %s17_s15, 128  ;;  %p471_p12 = scmp.lt.s32.totalorder %s17_s15, %s17_s15 }
  0x19   :  { %p467_p11 = scmp.ne.s32.totalorder %s17_s15, %s466_s6  ;;  %p472_p13 = scmp.lt.s32.totalorder %s466_s6, %s466_s6 }
  0x1b   :  { %p473_p0 = por %p472_p13, %p471_p12 }
  0x1d   :  { %p474_p1 = pnand %p473_p0, %p467_p11 }
  0x1f   :  { %477 = shalt.err (!%p474_p1)
}
  0x20   :  { %19 = dma.hbm_to_vmem [thread:$0]  %s576_s0, 128, %s17_s15, [#allocation3]  }
  0x21   :  { %s506_s8 = smov [#allocation6]   ;;  %s478_s12 = scalar_lea.hbm %s578_s2, 2944 }
  0x22   :  { %s35_s9 = sshll.u32 %s506_s8, 4  ;;  %p479_p2 = scmp.ne.s32.totalorder %s578_s2, %s478_s12  ;;  %s36_s9 = int_to_ptr.vmem [resolvable:$true] %s35_s9 }
  0x23   :  { %p482_p3 = scmp.lt.u32.totalorder %s478_s12, %s578_s2 }
  0x25   :  { %p484_p4 = pnand %p482_p3, %p479_p2 }
  0x27   :  { %487 = shalt.err (!%p484_p4)
}
  0x28   :  { %s488_s18 = scalar_lea.vmem %s36_s9, 2944  ;;  %p493_p6 = scmp.lt.s32.totalorder %s36_s9, %s36_s9 }
  0x29   :  { %p489_p5 = scmp.ne.s32.totalorder %s36_s9, %s488_s18  ;;  %p494_p7 = scmp.lt.s32.totalorder %s488_s18, %s488_s18 }
  0x2b   :  { %p495_p8 = por %p494_p7, %p493_p6 }
  0x2d   :  { %p496_p9 = pnand %p495_p8, %p489_p5 }
  0x2f   :  { %499 = shalt.err (!%p496_p9)
}
  0x30   :  { %s507_s0 = smov 128   ;;  %s508_s15 = smov 8  }
  0x31   :  { %41 = dma.hbm_to_vmem [thread:$0]  %s578_s2, 2944, %s36_s9, [#allocation5], %s507_s0, %s507_s0, %s508_s15  }
  0x32   :  { %500 = dma.done.wait [#allocation3], 128  }
  0x33   :  { %501 = vsyncadd [#allocation3], 4294967168 }
  0x34   :  { %502 = dma.done.wait [#allocation5], 3072  }
  0x35   :  { %503 = vsyncadd [#allocation5], 4294964224  ;;  %v509_v0 = vmov 0.0|0.0   ;;  %vm510_vm0 = vmmov 0   ;;  %v511_v1 = vmov 0.0   ;;  %v53_v2 = vld [vmem:[#allocation6 + $0x10] sm:$0xff] }
  0x36   :  { %396 = vmatprep.subr.bf16.mxu1 %v509_v0  ;;  %351 = vmatprep.mubr.msk.f32.mxu1 %vm510_vm0, %v511_v1  ;;  %v54_v3 = vld [vmem:[#allocation6 + $0x18] sm:$0xff]  ;;  %v51_v5 = vld [vmem:[#allocation6] sm:$0xff]  ;;  %v52_v6 = vld [vmem:[#allocation6 + $0x8] sm:$0xff]  ;;  %vm76_vm1 = vcmask 130048   ;;  %vm311_vm2 = vcmask 7168  }
  0x37   :  { %402 = vmatprep.subr.bf16.mxu0 %v509_v0  ;;  %393 = vmatprep.mubr.msk.f32.mxu0 %vm510_vm0, %v511_v1  ;;  %v397_v4 = vpack.c.bf16 %v54_v3, %v53_v2  ;;  %v56_v7 = vld [vmem:[#allocation6 + $0x28] sm:$0xff]  ;;  %v57_v8 = vld [vmem:[#allocation6 + $0x30] sm:$0xff]  ;;  %v58_v9 = vld [vmem:[#allocation6 + $0x38] sm:$0xff]  ;;  %v400_v11 = vpack.c.bf16 %v52_v6, %v51_v5 }
  0x38   :  { %v75_v10 = vld [vmem:[#allocation4] sm:$0xff]  ;;  %v403_v12 = vpack.c.bf16 %v57_v8, %v56_v7  ;;  %v59_v13 = vld [vmem:[#allocation6 + $0x40] sm:$0xff]  ;;  %v60_v15 = vld [vmem:[#allocation6 + $0x48] sm:$0xff] }
  0x39   :  { %398 = vmatpush3.bf16.msra.mxu1 %v397_v4  ;;  %v406_v14 = vpack.c.bf16 %v59_v13, %v58_v9  ;;  %v61_v16 = vld [vmem:[#allocation6 + $0x50] sm:$0xff]  ;;  %v62_v19 = vld [vmem:[#allocation6 + $0x58] sm:$0xff]  ;;  %v63_v20 = vld [vmem:[#allocation6 + $0x60] sm:$0xff] }
  0x3a   :  { %399 = vmatprep.subr.bf16.mxu1 %v509_v0  ;;  %404 = vmatpush3.bf16.msra.mxu0 %v403_v12  ;;  %v74_v17 = vld [vmem:[#allocation2] sm:$0xff]  ;;  %v409_v18 = vpack.c.bf16 %v61_v16, %v60_v15  ;;  %v412_v21 = vpack.c.bf16 %v63_v20, %v62_v19  ;;  %v64_v22 = vld [vmem:[#allocation6 + $0x68] sm:$0xff]  ;;  %v66_v25 = vld [vmem:[#allocation6 + $0x78] sm:$0xff] }
  0x3b   :  { %405 = vmatprep.subr.bf16.mxu0 %v509_v0  ;;  %v65_v23 = vld [vmem:[#allocation6 + $0x70] sm:$0xff]  ;;  %v67_v26 = vld [vmem:[#allocation6 + $0x80] sm:$0xff]  ;;  %v68_v28 = vld [vmem:[#allocation6 + $0x88] sm:$0xff] }
  0x3c   :  { %352 = vmatmul.mubr.msk.f32.vlgmr.msra.gmra.mrb[0].mxu1 %vm76_vm1, %v75_v10  ;;  %v415_v24 = vpack.c.bf16 %v65_v23, %v64_v22  ;;  %v418_v27 = vpack.c.bf16 %v67_v26, %v66_v25  ;;  %v69_v29 = vld [vmem:[#allocation6 + $0x90] sm:$0xff]  ;;  %v70_v31 = vld [vmem:[#allocation6 + $0x98] sm:$0xff]  ;;  %v71_v32 = vld [vmem:[#allocation6 + $0xa0] sm:$0xff] }
  0x3d   :  { %401 = vmatpush3.bf16.msra.mxu1 %v400_v11  ;;  %358 = vmatprep.mubr.msk.f32.mxu1 %vm510_vm0, %v511_v1  ;;  %v421_v30 = vpack.c.bf16 %v69_v29, %v68_v28  ;;  %v424_v33 = vpack.c.bf16 %v71_v32, %v70_v31  ;;  %v321_v36 = vld [vmem:[#allocation6 + $0x20] ss:$0 sm:$0xff]  ;;  %v322_v42 = vld [vmem:[#allocation6 + $0xa8] ss:$0 sm:$0xff]  ;;  %v323_v46 = vld [vmem:[#allocation6 + $0xb0] ss:$0 sm:$0xff] }
  0x3e   :  { %407 = vmatpush3.bf16.msra.mxu0 %v406_v14 }
  0x3f   :  { %408 = vmatprep.subr.bf16.mxu0 %v509_v0 }
  0x40   :  { %359 = vmatmul.mubr.msk.f32.vlgmr.msra.gmra.mrb[2].mxu1 %vm76_vm1, %v74_v17 }
  0x42   :  { %410 = vmatpush3.bf16.msra.mxu0 %v409_v18 }
  0x43   :  { %411 = vmatprep.subr.bf16.mxu0 %v509_v0 }
  0x46   :  { %413 = vmatpush3.bf16.msra.mxu0 %v412_v21 }
  0x47   :  { %414 = vmatprep.subr.bf16.mxu0 %v509_v0 }
  0x4a   :  { %416 = vmatpush3.bf16.msra.mxu0 %v415_v24 }
  0x4b   :  { %417 = vmatprep.subr.bf16.mxu0 %v509_v0 }
  0x4e   :  { %419 = vmatpush3.bf16.msra.mxu0 %v418_v27 }
  0x4f   :  { %420 = vmatprep.subr.bf16.mxu0 %v509_v0 }
  0x52   :  { %422 = vmatpush3.bf16.msra.mxu0 %v421_v30 }
  0x53   :  { %423 = vmatprep.subr.bf16.mxu0 %v509_v0 }
  0x56   :  { %425 = vmatpush3.bf16.msra.mxu0 %v424_v33 }
 0x10f   :  { %v146_v34 = vpop.f32.mrb[0].mxu1 }
 0x110   :  { %v353_v35 = vpop.f32.mrb[1].mxu1 }
 0x113   :  { %v219_v37 = vpop.f32.mrb[2].mxu1 }
 0x114   :  { %v220_v38 = vadd.f32 %v219_v37, %v146_v34  ;;  %v360_v39 = vpop.f32.mrb[3].mxu1 }
 0x116   :  { %v227_v40 = vadd.f32 %v321_v36, %v220_v38 }
 0x118   :  { %v228_v41 = vmax.f32 %v227_v40, 0.0 }
 0x11a   :  { %394 = vmatmul.mubr.f32.vlgmr.msra.gmra.mrb[0].mxu0 %v228_v41 }
 0x1ed   :  { %v299_v43 = vpop.f32.mrb[0].mxu0 }
 0x1ee   :  { %v300_v44 = vadd.f32 %v322_v42, %v299_v43  ;;  %v395_v45 = vpop.f32.mrb[1].mxu0 }
 0x1f0   :  { %v303_v47 = vmax.f32 %v300_v44, 0.0 }
 0x1f2   :  { %v308_v48 = vmul.f32 %v323_v46, %v303_v47 }
 0x1f4   :  { %309 = vadd.xlane.f32.xlu0 %v308_v48 }
 0x281   :  { %v310_v49 = vpop.xlane.xlu0 %309 }
 0x282   :  { %312 = vst.msk [vmem:[%s579_s3] sm:$0xff] %vm311_vm2, %v310_v49 }
 0x283   :  { %317 = vsyncpa [#allocation3], 1 }
 0x284   :  { %318 = vsyncpa [#allocation5], 1 }

</bundles_post_ra>
